<compile_context>
chip_gen: v7x
topology: tpu7x:2x2x1
jax: 0.10.0
libtpu: 0.0.40
codegen_flags: <defaults>
</compile_context>

<pallas_src>
import functools

import jax
import jax.numpy as jnp
from jax.experimental import pallas as pl
from jax.experimental.pallas import tpu as pltpu


def _cdiv(a, b):
    return (a + b - 1) // b


def _round_up(a, m):
    return _cdiv(a, m) * m


def _upsample_kernel(uw_ref, x_ref, o_ref, *, n_split):
    """uw_ref: (K, Nout) bf16 0/1 replication matrix (resident across steps).
    x_ref:  (TRg, K) native dtype input tile (g input rows folded per row).
    o_ref:  (TRg, Nout) f32 output tile (width+height replicated, final layout).
    """
    u = uw_ref[...]                                  # bf16 0/1, exact
    rem = x_ref[...].astype(jnp.float32)             # (TRg, K)
    for i in range(n_split):
        part = rem.astype(jnp.bfloat16)              # exact split component
        d = jnp.dot(part, u, preferred_element_type=jnp.float32)
        if i == 0:
            o_ref[...] = d                           # accumulate in the out block
        else:
            o_ref[...] += d
        if i + 1 < n_split:
            rem = rem - part.astype(jnp.float32)     # exact residual in f32


def g_upsample_2d(x, scale_factor=2):
    """Nearest-neighbor upsample of x[B, C, G, H, W] -> [B, C, G, sH, sW] (f32)."""
    s = int(scale_factor)
    if s != scale_factor or s < 1:
        raise ValueError("g_upsample_2d only supports positive integer scale factors")

    B, C, G, H, W = x.shape
    sH, sW = s * H, s * W
    R = B * C * G * H                     # total input rows

    # ---- Lane folding factor g (largest divisor of R with g*W ~<= 128) -----
    g_max = min(max(1, 128 // W), R)
    g = 1
    for cand in range(g_max, 0, -1):
        if R % cand == 0:
            g = cand
            break

    Rg = R // g                           # folded row-groups
    K = g * W                             # folded input width (lanes)
    Nout = g * s * s * W                  # folded output width (lanes)

    # Contiguous (free) reshape; cast to f32 happens in-kernel.
    x_rows = x.reshape(Rg, K)

    # ---- Host-precomputed block-diagonal 0/1 replication matrix ------------
    # out[p, j] = in[p, src[j]],  src[j] = (j // (s*s*W)) * W + (j % (s*W)) // s
    kk = jnp.arange(K, dtype=jnp.int32)
    jj = jnp.arange(Nout, dtype=jnp.int32)
    src = (jj // (s * s * W)) * W + (jj % (s * W)) // s
    uw = (kk[:, None] == src[None, :]).astype(jnp.bfloat16)

    # Number of exact bf16 split passes (f32 needs 3; bf16 input is exact in 1).
    n_split = 1 if x.dtype == jnp.bfloat16 else 3

    # ---- Row-tile size from a padded VMEM byte budget ----------------------
    Kp = _round_up(K, 128)                # lane-padded widths
    Np = _round_up(Nout, 128)
    bytes_in_row = Kp * 4                 # budget f32 even for narrower inputs
    bytes_out_row = Np * 4
    per_row = (2 * bytes_in_row          # double-buffered input blocks
               + 2 * bytes_out_row       # double-buffered output blocks
               + 2 * bytes_in_row        # f32 cast + residual temps
               + 3 * (Kp * 2)            # bf16 split components
               + bytes_out_row)          # one matmul-result temp
    VMEM_BUDGET = 18 * 1024 * 1024       # keeps total well under 28 MiB (v7x safe)
    trg_max = max(8, (VMEM_BUDGET // per_row) // 8 * 8)

    # ---- Balanced grid: >= 8 steps when possible, even tile sizes ----------
    min_steps_budget = _cdiv(Rg, trg_max)
    pipeline_steps = max(1, min(8, Rg // 8))
    n_steps = max(min_steps_budget, pipeline_steps)
    TRg = _round_up(_cdiv(Rg, n_steps), 8)
    if TRg >= Rg:
        TRg = Rg                          # single full-extent block
    n_steps = _cdiv(Rg, TRg)

    in_bytes = R * W * x.dtype.itemsize
    out_bytes = Rg * Nout * 4
    uw_bytes = K * Nout * 2
    cost = pl.CostEstimate(
        flops=2 * n_split * Rg * K * Nout,
        transcendentals=0,
        bytes_accessed=in_bytes + out_bytes + uw_bytes,
    )

    out_rows = pl.pallas_call(
        functools.partial(_upsample_kernel, n_split=n_split),
        out_shape=jax.ShapeDtypeStruct((Rg, Nout), jnp.float32),
        grid_spec=pltpu.PrefetchScalarGridSpec(
            num_scalar_prefetch=0,
            grid=(n_steps,),
            in_specs=[
                pl.BlockSpec((K, Nout), lambda r: (0, 0)),   # resident, fetched once
                pl.BlockSpec((TRg, K), lambda r: (r, 0)),
            ],
            out_specs=pl.BlockSpec((TRg, Nout), lambda r: (r, 0)),
        ),
        compiler_params=pltpu.CompilerParams(
            dimension_semantics=("parallel",),
            vmem_limit_bytes=28 * 1024 * 1024,
        ),
        cost_estimate=cost,
    )(uw, x_rows)

    # (Rg, g*s*s*W) is already the contiguous final layout -> free reshape.
    return out_rows.reshape(B, C, G, sH, sW)


def _reference(x, scale_factor=2):
    """Pure-JAX nearest-neighbor reference for validation."""
    s = int(scale_factor)
    B, C, G, H, W = x.shape
    y = jnp.broadcast_to(
        x[:, :, :, :, None, :, None].astype(jnp.float32),
        (B, C, G, H, s, W, s),
    ).reshape(B, C, G, s * H, s * W)
    return y


if __name__ == "__main__":
    key = jax.random.PRNGKey(0)
    B, C, G, H, W = 2, 4, 8, 16, 16
    scale = 2  # GUpsample2D default scale_factor

    x = jax.random.normal(key, (B, C, G, H, W), dtype=jnp.float32)

    y = g_upsample_2d(x, scale_factor=scale)
    y = jax.block_until_ready(y)

    y_ref = _reference(x, scale_factor=scale)
    assert y.shape == (B, C, G, scale * H, scale * W)
    assert y.dtype == jnp.float32
    # Nearest upsample is an exact copy; the split-bf16 matmul path is bit-exact.
    assert jnp.array_equal(y, y_ref)

    print("KERNEL_OK")
</pallas_src>

<mosaic_0001>
module attributes {stable_mosaic.version = 11 : i64} {
  func.func @_upsample_kernel(%arg0: i32, %arg1: memref<128x512xbf16, #tpu.memory_space<vmem>>, %arg2: memref<16x128xf32, #tpu.memory_space<vmem>>, %arg3: memref<16x512xf32, #tpu.memory_space<vmem>>) attributes {dimension_semantics = [#tpu.dimension_semantics<parallel>], iteration_bounds = array<i64: 8>, scalar_prefetch = 0 : i64, scratch_operands = 0 : i64, tpu.core_type = #tpu.core_type<tc>, window_params = [{pipeline_mode = #tpu.pipeline_mode<synchronous>, transform_indices = @transform_0, window_bounds = array<i64: 128, 512>}, {transform_indices = @transform_1, window_bounds = array<i64: 16, 128>}, {transform_indices = @transform_2, window_bounds = array<i64: 16, 512>}]} {
    %c0 = arith.constant 0 : index
    %c0_0 = arith.constant 0 : index
    %0 = vector.load %arg1[%c0, %c0_0] : memref<128x512xbf16, #tpu.memory_space<vmem>>, vector<128x512xbf16>
    %c0_1 = arith.constant 0 : index
    %c0_2 = arith.constant 0 : index
    %1 = vector.load %arg2[%c0_1, %c0_2] : memref<16x128xf32, #tpu.memory_space<vmem>>, vector<16x128xf32>
    %2 = arith.truncf %1 : vector<16x128xf32> to vector<16x128xbf16>
    %cst = arith.constant dense<0.000000e+00> : vector<16x512xf32>
    %3 = tpu.matmul %2, %0, %cst {dimension_numbers = #tpu.dot_dimension_numbers<[1], [0], [0], [1], [0, 0, 1, 1], [], []>} : vector<16x128xbf16>, vector<128x512xbf16>, vector<16x512xf32> -> vector<16x512xf32>
    %c0_3 = arith.constant 0 : index
    %c0_4 = arith.constant 0 : index
    %4 = vector.load %arg3[%c0_3, %c0_4] : memref<16x512xf32, #tpu.memory_space<vmem>>, vector<16x512xf32>
    tpu.vector_store %arg3[%c0_3, %c0_4], %3 {strides = array<i32>} : memref<16x512xf32, #tpu.memory_space<vmem>>, vector<16x512xf32>,
    %5 = arith.extf %2 : vector<16x128xbf16> to vector<16x128xf32>
    %6 = arith.subf %1, %5 : vector<16x128xf32>
    %7 = arith.truncf %6 : vector<16x128xf32> to vector<16x128xbf16>
    %cst_5 = arith.constant dense<0.000000e+00> : vector<16x512xf32>
    %8 = tpu.matmul %7, %0, %cst_5 {dimension_numbers = #tpu.dot_dimension_numbers<[1], [0], [0], [1], [0, 0, 1, 1], [], []>} : vector<16x128xbf16>, vector<128x512xbf16>, vector<16x512xf32> -> vector<16x512xf32>
    %c0_6 = arith.constant 0 : index
    %c0_7 = arith.constant 0 : index
    %9 = vector.load %arg3[%c0_6, %c0_7] : memref<16x512xf32, #tpu.memory_space<vmem>>, vector<16x512xf32>
    %10 = arith.addf %9, %8 : vector<16x512xf32>
    %c0_8 = arith.constant 0 : index
    %c0_9 = arith.constant 0 : index
    %11 = vector.load %arg3[%c0_8, %c0_9] : memref<16x512xf32, #tpu.memory_space<vmem>>, vector<16x512xf32>
    tpu.vector_store %arg3[%c0_8, %c0_9], %10 {strides = array<i32>} : memref<16x512xf32, #tpu.memory_space<vmem>>, vector<16x512xf32>,
    %12 = arith.extf %7 : vector<16x128xbf16> to vector<16x128xf32>
    %13 = arith.subf %6, %12 : vector<16x128xf32>
    %14 = arith.truncf %13 : vector<16x128xf32> to vector<16x128xbf16>
    %cst_10 = arith.constant dense<0.000000e+00> : vector<16x512xf32>
    %15 = tpu.matmul %14, %0, %cst_10 {dimension_numbers = #tpu.dot_dimension_numbers<[1], [0], [0], [1], [0, 0, 1, 1], [], []>} : vector<16x128xbf16>, vector<128x512xbf16>, vector<16x512xf32> -> vector<16x512xf32>
    %c0_11 = arith.constant 0 : index
    %c0_12 = arith.constant 0 : index
    %16 = vector.load %arg3[%c0_11, %c0_12] : memref<16x512xf32, #tpu.memory_space<vmem>>, vector<16x512xf32>
    %17 = arith.addf %16, %15 : vector<16x512xf32>
    %c0_13 = arith.constant 0 : index
    %c0_14 = arith.constant 0 : index
    %18 = vector.load %arg3[%c0_13, %c0_14] : memref<16x512xf32, #tpu.memory_space<vmem>>, vector<16x512xf32>
    tpu.vector_store %arg3[%c0_13, %c0_14], %17 {strides = array<i32>} : memref<16x512xf32, #tpu.memory_space<vmem>>, vector<16x512xf32>,
    return
  }
  func.func @transform_0(%arg0: i32) -> (i32, i32) {
    %c0_i32 = arith.constant 0 : i32
    %c0_i32_0 = arith.constant 0 : i32
    %c0_i32_1 = arith.constant 0 : i32
    return %c0_i32, %c0_i32_0 : i32, i32
  }
  func.func @transform_1(%arg0: i32) -> (i32, i32) {
    %c0_i32 = arith.constant 0 : i32
    %c0_i32_0 = arith.constant 0 : i32
    return %arg0, %c0_i32 : i32, i32
  }
  func.func @transform_2(%arg0: i32) -> (i32, i32) {
    %c0_i32 = arith.constant 0 : i32
    %c0_i32_0 = arith.constant 0 : i32
    return %arg0, %c0_i32 : i32, i32
  }
}

</mosaic_0001>

<bundles_post_ra>
// kernel: tpu_custom_call.1
= control target key start
LH: loop header
LB: loop body
LE: loop exit
PB: predicated region body
PF: predicated region fallthrough
CT: control target
= control target key end

     0   :  { %7 = vsyncpa [#allocation3], 0  ;;  %s1497_s0 = inlined_call_operand.hbm [shape: bf16[128,512], index: 0, kind: input, shape index: {}]   ;;  %s1498_s1 = inlined_call_operand.hbm [shape: f32[128,128], index: 1, kind: input, shape index: {}]   ;;  %s1499_s2 = inlined_call_operand.hbm [shape: f32[128,512], index: 2, kind: output, shape index: {}]  }
   0x1   :  { %8 = vsyncpa [#allocation6], 0 }
   0x2   :  { %10 = vsyncpa [#allocation6 + $0x1], 0 }
   0x3   :  { %11 = vsyncpa [#allocation4], 0 }
   0x4   :  { %13 = vsyncpa [#allocation4 + $0x1], 0  ;;  %s1134_s9 = smov 0   ;;  %s1136_s10 = smov 0  }
   0x5   :  { %s1138_s11 = smov 0   ;;  %s1140_s12 = smov 0  }
   0x6 LB: > { %s1155_s13 = sadd.s32 4294967295, %s1107_s12   ;;  %s799_s14 = sadd.s32 4294967294, %s1107_s12   ;;  %s1107_s12 = sphi %s1140_s12, %s1518_s12   ;;  %s1103_s11 = sphi %s1138_s11, %s1517_s11   ;;  %s1099_s10 = sphi %s1136_s10, %s1516_s10   ;;  %s1095_s9 = sphi %s1134_s9, %s1515_s9  }
   0x7   : > { %p60_p0 = scmp.ne.s32.totalorder %s1099_s10, %s1095_s9  ;;  %p1500_p1 = scmp.eq.s32.totalorder %s1155_s13, 0 }
   0x8   : > { %p90_p3 = scmp.eq.s32.totalorder %s799_s14, 7  ;;  %p800_p5 = scmp.ge.s32.totalorder %s1107_s12, 1 }
   0x9   : > { %p1164_p4 = por %p1500_p1, %p60_p0  ;;  %p97_p7 = scmp.lt.s32.totalorder %s1107_s12, 9 }
   0xa   : > { %p1169_p6 = por %p90_p3, %p60_p0  ;;  %s1109_s18 = smov [#allocation2]  }
   0xb   : > { %s1503_s15 = scalar_select %p1164_p4, 1, 0 }
   0xc   : > { %s1504_s16 = scalar_select %p1169_p6, 1, 0 }
   0xd   : > { %p1174_p8 = pnand %p800_p5, %p97_p7  ;;  %s109_s19 = sshll.u32 %s1109_s18, 4  ;;  %s110_s19 = int_to_ptr.vmem [resolvable:$true] %s109_s19 }
   0xe   : > { %s1187_s21 = sadd.s32 1, %s1107_s12   ;;  %s47_s22 = sadd.s32 1, %s1103_s11 }
   0xf   : > { %s1505_s17 = scalar_select %p1174_p8, 1, 0 }
  0x10   : > { %p875_p9 = pneg %p1174_p8  ;;  %s44_s23 = ssub.s32 %s1107_s12, %s1187_s21 }
  0x11   : > { %s979_s26 = scalar_lea.hbm %s1497_s0, 4096 }
  0x12   : > { %p1182_p10 = pnand %p875_p9, %p1500_p1  ;;  %p980_p11 = scmp.ne.s32.totalorder %s1497_s0, %s979_s26 }
  0x13   : > { %p986_p3 = scmp.lt.u32.totalorder %s979_s26, %s1497_s0 }
  0x14   : > { %p981_p12 = pneg %p1182_p10 }
  0x16   : > { %p982_p13 = pnand %p981_p12, %p980_p11 }
  0x18   : > { %p983_p0 = pneg %p982_p13 }
  0x1a   : > { %p988_p5 = pnand %p986_p3, %p983_p0 }
  0x1c   : > { %991 = shalt.err (!%p988_p5)
}
  0x1d   : > { %s992_s3 = scalar_lea.vmem %s110_s19, 4096  ;;  %p1000_p2 = scmp.lt.s32.totalorder %s110_s19, %s110_s19 }
  0x1e   : > { %p993_p7 = scmp.ne.s32.totalorder %s110_s19, %s992_s3  ;;  %p1001_p6 = scmp.lt.s32.totalorder %s992_s3, %s992_s3 }
  0x20   : > { %p995_p9 = pnand %p993_p7, %p981_p12  ;;  %p1002_p4 = por %p1001_p6, %p1000_p2 }
  0x22   : > { %p996_p1 = pneg %p995_p9 }
  0x24   : > { %p1003_p8 = pnand %p1002_p4, %p996_p1 }
  0x26   : > { %1006 = shalt.err (!%p1003_p8)
}
  0x27   : > { %s1110_s4 = smov 256   ;;  %s1111_s5 = smov 16  }
  0x28   : > { %878 = dma.hbm_to_vmem [thread:$0]  (!%p1182_p10), %s1497_s0, 4096, %s110_s19, [#allocation3], %s1110_s4, %s1110_s4, %s1111_s5  }
  0x29   : > { %p45_p11 = scmp.eq.s32.totalorder %s44_s23, 0  ;;  %p54_p2 = scmp.ne.s32.totalorder %s1103_s11, %s1099_s10 }
  0x2a   : > { %p55_p1 = scmp.eq.s32.totalorder %s1107_s12, 0  ;;  %p888_p4 = scmp.lt.s32.totalorder %s1107_s12, 8 }
  0x2b   : > { %s1213_s8 = scalar_select %p45_p11, %s1103_s11, %s47_s22  }
  0x2c   : > { %p56_p6 = por %p55_p1, %p54_p2  ;;  %p1507_p8 = scmp.eq.s32.totalorder %s1155_s13, 7 }
  0x2d   : > { %s123_s18 = sand.u32 1, %s1103_s11   ;;  %s848_s24 = sshll.u32 %s1107_s12, 8 }
  0x2e   : > { %p1217_p12 = por %p1507_p8, %p54_p2  ;;  %s803_s25 = sshll.u32 %s123_s18, 4 }
  0x2f   : > { %s1226_s27 = scalar_lea.hbm %s1498_s1, %s848_s24  ;;  %s127_s19 = scalar_lea.vmem [#allocation5], %s803_s25 }
  0x30   : > { %s134_s22 = sshll.u32 %s127_s19, 4  ;;  %p1228_p10 = pnand %p888_p4, %p56_p6  ;;  %s1232_s22 = int_to_ptr.vmem [resolvable:$true] %s134_s22 }
  0x31   : > { %s1234_s28 = scalar_lea.sflag [#allocation6], %s123_s18  ;;  %s1007_s29 = scalar_lea.hbm %s1226_s27, 256 }
  0x32   : > { %p1008_p13 = scmp.ne.s32.totalorder %s1226_s27, %s1007_s29  ;;  %p1009_p0 = pneg %p1228_p10 }
  0x33   : > { %s1012_s4 = scalar_lea.hbm %s1498_s1, 2048  ;;  %p1013_p7 = scmp.lt.u32.totalorder %s1226_s27, %s1498_s1 }
  0x34   : > { %p1010_p3 = pnand %p1009_p0, %p1008_p13  ;;  %p1014_p9 = scmp.lt.u32.totalorder %s1012_s4, %s1007_s29 }
  0x35   : > { %p1016_p2 = scmp.lt.u32.totalorder %s1007_s29, %s1226_s27 }
  0x36   : > { %p1011_p5 = pneg %p1010_p3  ;;  %p1015_p11 = por %p1014_p9, %p1013_p7 }
  0x38   : > { %p1017_p1 = por %p1016_p2, %p1015_p11 }
  0x3a   : > { %p1018_p4 = pnand %p1017_p1, %p1011_p5 }
  0x3c   : > { %1021 = shalt.err (!%p1018_p4)
}
  0x3d   : > { %s1022_s7 = scalar_lea.vmem %s1232_s22, 256  ;;  %s1112_s18 = smov [#allocation5]  }
  0x3e   : > { %p1023_p6 = scmp.ne.s32.totalorder %s1232_s22, %s1022_s7  ;;  %s1027_s24 = sshll.u32 %s1112_s18, 4  ;;  %s1028_s24 = int_to_ptr.vmem [resolvable:$false] %s1027_s24 }
  0x3f   : > { %s1029_s25 = scalar_lea.vmem %s1028_s24, 512  ;;  %p1030_p3 = scmp.lt.s32.totalorder %s1232_s22, %s1028_s24 }
  0x40   : > { %p1025_p8 = pnand %p1023_p6, %p1009_p0  ;;  %p1031_p7 = scmp.lt.s32.totalorder %s1029_s25, %s1022_s7 }
  0x42   : > { %p1026_p13 = pneg %p1025_p8  ;;  %p1032_p9 = por %p1031_p7, %p1030_p3 }
  0x44   : > { %p1033_p11 = pnand %p1032_p9, %p1026_p13 }
  0x46   : > { %1036 = shalt.err (!%p1033_p11)
}
  0x47   : > { %s1113_s20 = smov 128   ;;  %s1114_s26 = smov 8  }
  0x48   : > { %882 = dma.hbm_to_vmem [thread:$0]  (!%p1228_p10), %s1226_s27, 256, %s1232_s22, %s1234_s28, %s1113_s20, %s1113_s20, %s1114_s26  }
  0x49   : > { %p1510_p0 = scmp.ne.s32.totalorder %s1505_s17, 0 }
  0x4a   : > { %p1511_p5 = scmp.eq.s32.totalorder (!%p1510_p0), %s1155_s13, 0 }
  0x4b   : > { %146 = sbr.rel (%p1510_p0) target bundleno = 415 (0x19f), region = 28 }
  0x52   : > { %1082 = dma.done.wait (%p1511_p5), [#allocation3], 4096   ;;  %p1512_p2 = pmov %p1511_p5 }
  0x53   : > { %s1269_s19 = sand.u32 1, %s1099_s10   ;;  %p1513_p10 = scmp.ne.s32.totalorder %s1503_s15, 0 }
  0x54   : > { %1084 = vsyncadd (%p1512_p2), [#allocation3], 4294963200  ;;  %s808_s29 = sshll.u32 %s1269_s19, 4  ;;  %s153_s30 = scalar_lea.sflag [#allocation6], %s1269_s19 }
  0x55   : > { %s1273_s3 = scalar_lea.vmem [#allocation5], %s808_s29 }
  0x56   : > { %1086 = dma.done.wait (%p1513_p10), %s153_s30, 256  }
  0x57   : > { %1088 = vsyncadd (%p1513_p10), %s153_s30, 4294967040  ;;  %v1115_v0 = vmov 0   ;;  %v1281_v1 = vld [vmem:[#allocation2 + $0x4] ss:$16 sps:$4 sm:$0xff]   ;;  %v1283_v2 = vld [vmem:[#allocation2 + $0xc] ss:$16 sps:$4 sm:$0xff]  }
  0x58   : > { %407 = vmatprep.mubr.bf16.mxu0 %v1115_v0  ;;  %450 = vmatprep.mubr.bf16.mxu1 %v1115_v0  ;;  %v1286_v3 = vld [vmem:[#allocation2] ss:$16 sps:$4 sm:$0xff]   ;;  %v1288_v4 = vld [vmem:[#allocation2 + $0x8] ss:$16 sps:$4 sm:$0xff]   ;;  %v1291_v5 = vld [vmem:[#allocation2 + $0x24] ss:$16 sps:$4 sm:$0xff]  }
  0x59   : > { %375 = vmatprep.subr.bf16.mxu0 %v1281_v1  ;;  %418 = vmatprep.subr.bf16.mxu1 %v1283_v2  ;;  %v1295_v6 = vld [vmem:[#allocation2 + $0x2c] ss:$16 sps:$4 sm:$0xff]   ;;  %v1297_v7 = vld [vmem:[#allocation2 + $0x20] ss:$16 sps:$4 sm:$0xff]   ;;  %v1300_v8 = vld [vmem:[#allocation2 + $0x28] ss:$16 sps:$4 sm:$0xff]  }
  0x5a   : > { %376 = vmatpush1.bf16.msra.mxu0 %v1286_v3  ;;  %419 = vmatpush1.bf16.msra.mxu1 %v1288_v4  ;;  %v1303_v9 = vld [vmem:[#allocation2 + $0x44] ss:$16 sps:$4 sm:$0xff]   ;;  %v1305_v10 = vld [vmem:[#allocation2 + $0x4c] ss:$16 sps:$4 sm:$0xff]   ;;  %v1307_v11 = vld [vmem:[#allocation2 + $0x40] ss:$16 sps:$4 sm:$0xff]  }
  0x5b   : > { %377 = vmatprep.subr.bf16.mxu0 %v1291_v5  ;;  %420 = vmatprep.subr.bf16.mxu1 %v1295_v6  ;;  %v1309_v12 = vld [vmem:[#allocation2 + $0x48] ss:$16 sps:$4 sm:$0xff]   ;;  %v1313_v13 = vld [vmem:[#allocation2 + $0x64] ss:$16 sps:$4 sm:$0xff]   ;;  %v1317_v14 = vld [vmem:[#allocation2 + $0x6c] ss:$16 sps:$4 sm:$0xff]  }
  0x5c   : > { %v1319_v15 = vld [vmem:[#allocation2 + $0x60] ss:$16 sps:$4 sm:$0xff]   ;;  %v1323_v16 = vld [vmem:[#allocation2 + $0x68] ss:$16 sps:$4 sm:$0xff]   ;;  %v1325_v17 = vld [vmem:[#allocation2 + $0x84] ss:$16 sps:$4 sm:$0xff]  }
  0x5d   : > { %v1329_v18 = vld [vmem:[#allocation2 + $0x8c] ss:$16 sps:$4 sm:$0xff]   ;;  %v1331_v19 = vld [vmem:[#allocation2 + $0x80] ss:$16 sps:$4 sm:$0xff]   ;;  %v1333_v20 = vld [vmem:[#allocation2 + $0x88] ss:$16 sps:$4 sm:$0xff]  }
  0x5e   : > { %378 = vmatpush1.bf16.msra.mxu0 %v1297_v7  ;;  %421 = vmatpush1.bf16.msra.mxu1 %v1300_v8  ;;  %v1337_v21 = vld [vmem:[#allocation2 + $0xa4] ss:$16 sps:$4 sm:$0xff]   ;;  %v1341_v22 = vld [vmem:[#allocation2 + $0xac] ss:$16 sps:$4 sm:$0xff]   ;;  %v1345_v23 = vld [vmem:[#allocation2 + $0xa0] ss:$16 sps:$4 sm:$0xff]  }
  0x5f   : > { %379 = vmatprep.subr.bf16.mxu0 %v1303_v9  ;;  %422 = vmatprep.subr.bf16.mxu1 %v1305_v10  ;;  %v1347_v24 = vld [vmem:[#allocation2 + $0xa8] ss:$16 sps:$4 sm:$0xff]   ;;  %v1351_v25 = vld [vmem:[#allocation2 + $0xc4] ss:$16 sps:$4 sm:$0xff]   ;;  %v1353_v26 = vld [vmem:[#allocation2 + $0xcc] ss:$16 sps:$4 sm:$0xff]  }
  0x60   : > { %v1357_v27 = vld [vmem:[#allocation2 + $0xc0] ss:$16 sps:$4 sm:$0xff]   ;;  %v1359_v28 = vld [vmem:[#allocation2 + $0xc8] ss:$16 sps:$4 sm:$0xff]   ;;  %v1363_v29 = vld [vmem:[#allocation2 + $0xe4] ss:$16 sps:$4 sm:$0xff]  }
  0x61   : > { %v1365_v30 = vld [vmem:[#allocation2 + $0xec] ss:$16 sps:$4 sm:$0xff]   ;;  %v1367_v31 = vld [vmem:[#allocation2 + $0xe0] ss:$16 sps:$4 sm:$0xff]   ;;  %v1371_v32 = vld [vmem:[#allocation2 + $0xe8] ss:$16 sps:$4 sm:$0xff]  }
  0x62   : > { %380 = vmatpush1.bf16.msra.mxu0 %v1307_v11  ;;  %423 = vmatpush1.bf16.msra.mxu1 %v1309_v12  ;;  %v212_v33 = vld [vmem:[%s1273_s3] sm:$0xff]  ;;  %v213_v34 = vld [vmem:[%s1273_s3 + $0x8] sm:$0xff]  ;;  %s809_s15 = sshll.u32 %s1269_s19, 6  ;;  %s850_s22 = sshll.u32 %s1155_s13, 10 }
  0x63   : > { %381 = vmatprep.subr.bf16.mxu0 %v1313_v13  ;;  %424 = vmatprep.subr.bf16.mxu1 %v1317_v14  ;;  %v214_v35 = vpack.c.bf16 %v213_v34, %v212_v33  ;;  %s176_s17 = scalar_lea.vmem [#allocation7], %s809_s15  ;;  %s1454_s4 = scalar_lea.hbm %s1499_s2, %s850_s22 }
  0x64   : > { %s714_s27 = sshll.u32 %s176_s17, 4  ;;  %s700_s13 = scalar_lea.sflag [#allocation4], %s1269_s19  ;;  %s1449_s27 = int_to_ptr.vmem [resolvable:$true] %s714_s27 }
  0x65   : > { %v469_v36 = vunpack.c.l.bf16 %v214_v35  ;;  %v470_v37 = vunpack.c.h.bf16 %v214_v35  ;;  %s1037_s5 = scalar_lea.vmem %s1449_s27, 1024  ;;  %s1116_s6 = smov [#allocation7]  }
  0x66   : > { %382 = vmatpush1.bf16.msra.mxu0 %v1319_v15  ;;  %425 = vmatpush1.bf16.msra.mxu1 %v1323_v16  ;;  %p1038_p1 = scmp.ne.s32.totalorder %s1449_s27, %s1037_s5  ;;  %s1041_s7 = sshll.u32 %s1116_s6, 4  ;;  %s1042_s7 = int_to_ptr.vmem [resolvable:$false] %s1041_s7 }
  0x67   : > { %383 = vmatprep.subr.bf16.mxu0 %v1325_v17  ;;  %426 = vmatprep.subr.bf16.mxu1 %v1329_v18  ;;  %v471_v38 = vsub.f32 %v212_v33, %v469_v36  ;;  %v472_v39 = vsub.f32 %v213_v34, %v470_v37  ;;  %s1043_s18 = scalar_lea.vmem %s1042_s7, 2048  ;;  %p1044_p8 = scmp.lt.s32.totalorder %s1449_s27, %s1042_s7 }
  0x68   : > { %p1039_p4 = pnand %p1038_p1, %p1217_p12  ;;  %p1045_p13 = scmp.lt.s32.totalorder %s1043_s18, %s1037_s5 }
  0x69   : > { %v473_v40 = vpack.c.bf16 %v472_v39, %v471_v38 }
  0x6a   : > { %384 = vmatpush1.bf16.msra.mxu0 %v1331_v19  ;;  %427 = vmatpush1.bf16.msra.mxu1 %v1333_v20  ;;  %p1040_p6 = pneg %p1039_p4  ;;  %p1046_p3 = por %p1045_p13, %p1044_p8 }
  0x6b   : > { %385 = vmatprep.subr.bf16.mxu0 %v1337_v21  ;;  %428 = vmatprep.subr.bf16.mxu1 %v1341_v22  ;;  %v584_v41 = vunpack.c.l.bf16 %v473_v40  ;;  %v585_v42 = vunpack.c.h.bf16 %v473_v40 }
  0x6c   : > { %p1047_p7 = pnand %p1046_p3, %p1040_p6 }
  0x6d   : > { %v586_v43 = vsub.f32 %v471_v38, %v584_v41  ;;  %v587_v44 = vsub.f32 %v472_v39, %v585_v42 }
  0x6e   : > { %386 = vmatpush1.bf16.msra.mxu0 %v1345_v23  ;;  %429 = vmatpush1.bf16.msra.mxu1 %v1347_v24 }
  0x6f   : > { %387 = vmatprep.subr.bf16.mxu0 %v1351_v25  ;;  %430 = vmatprep.subr.bf16.mxu1 %v1353_v26  ;;  %v588_v45 = vpack.c.bf16 %v587_v44, %v586_v43 }
  0x72   : > { %388 = vmatpush1.bf16.msra.mxu0 %v1357_v27  ;;  %431 = vmatpush1.bf16.msra.mxu1 %v1359_v28 }
  0x73   : > { %389 = vmatprep.subr.bf16.mxu0 %v1363_v29  ;;  %432 = vmatprep.subr.bf16.mxu1 %v1365_v30 }
  0x76   : > { %390 = vmatpush1.bf16.msra.mxu0 %v1367_v31  ;;  %433 = vmatpush1.bf16.msra.mxu1 %v1371_v32 }
  0x77   : > { %474 = vmatprep.subr.bf16.mxu0 %v1281_v1  ;;  %517 = vmatprep.subr.bf16.mxu1 %v1283_v2 }
  0x79   : > { %408 = vmatmul.mubr.bf16.vlgmr.msra.gmra.mrb[0].mxu0 %v214_v35  ;;  %451 = vmatmul.mubr.bf16.vlgmr.msra.gmra.mrb[0].mxu1 %v214_v35 }
  0x7a   : > { %475 = vmatpush1.bf16.msra.mxu0 %v1286_v3  ;;  %518 = vmatpush1.bf16.msra.mxu1 %v1288_v4 }
  0x7b   : > { %476 = vmatprep.subr.bf16.mxu0 %v1291_v5  ;;  %519 = vmatprep.subr.bf16.mxu1 %v1295_v6 }
  0x7c   : > { %506 = vmatprep.mubr.bf16.mxu0 %v1115_v0  ;;  %549 = vmatprep.mubr.bf16.mxu1 %v1115_v0 }
  0x7e   : > { %477 = vmatpush1.bf16.msra.mxu0 %v1297_v7  ;;  %520 = vmatpush1.bf16.msra.mxu1 %v1300_v8 }
  0x7f   : > { %478 = vmatprep.subr.bf16.mxu0 %v1303_v9  ;;  %521 = vmatprep.subr.bf16.mxu1 %v1305_v10 }
  0x82   : > { %479 = vmatpush1.bf16.msra.mxu0 %v1307_v11  ;;  %522 = vmatpush1.bf16.msra.mxu1 %v1309_v12 }
  0x83   : > { %480 = vmatprep.subr.bf16.mxu0 %v1313_v13  ;;  %523 = vmatprep.subr.bf16.mxu1 %v1317_v14 }
  0x86   : > { %481 = vmatpush1.bf16.msra.mxu0 %v1319_v15  ;;  %524 = vmatpush1.bf16.msra.mxu1 %v1323_v16 }
  0x87   : > { %482 = vmatprep.subr.bf16.mxu0 %v1325_v17  ;;  %525 = vmatprep.subr.bf16.mxu1 %v1329_v18 }
  0x8a   : > { %483 = vmatpush1.bf16.msra.mxu0 %v1331_v19  ;;  %526 = vmatpush1.bf16.msra.mxu1 %v1333_v20 }
  0x8b   : > { %484 = vmatprep.subr.bf16.mxu0 %v1337_v21  ;;  %527 = vmatprep.subr.bf16.mxu1 %v1341_v22 }
  0x8e   : > { %485 = vmatpush1.bf16.msra.mxu0 %v1345_v23  ;;  %528 = vmatpush1.bf16.msra.mxu1 %v1347_v24 }
  0x8f   : > { %486 = vmatprep.subr.bf16.mxu0 %v1351_v25  ;;  %529 = vmatprep.subr.bf16.mxu1 %v1353_v26 }
  0x92   : > { %487 = vmatpush1.bf16.msra.mxu0 %v1357_v27  ;;  %530 = vmatpush1.bf16.msra.mxu1 %v1359_v28 }
  0x93   : > { %488 = vmatprep.subr.bf16.mxu0 %v1363_v29  ;;  %531 = vmatprep.subr.bf16.mxu1 %v1365_v30 }
  0x96   : > { %489 = vmatpush1.bf16.msra.mxu0 %v1367_v31  ;;  %532 = vmatpush1.bf16.msra.mxu1 %v1371_v32 }
  0x97   : > { %589 = vmatprep.subr.bf16.mxu0 %v1281_v1  ;;  %632 = vmatprep.subr.bf16.mxu1 %v1283_v2 }
  0x99   : > { %507 = vmatmul.mubr.bf16.vlgmr.msra.gmra.mrb[0].mxu0 %v473_v40  ;;  %550 = vmatmul.mubr.bf16.vlgmr.msra.gmra.mrb[0].mxu1 %v473_v40 }
  0x9a   : > { %590 = vmatpush1.bf16.msra.mxu0 %v1286_v3  ;;  %633 = vmatpush1.bf16.msra.mxu1 %v1288_v4 }
  0x9b   : > { %591 = vmatprep.subr.bf16.mxu0 %v1291_v5  ;;  %634 = vmatprep.subr.bf16.mxu1 %v1295_v6 }
  0x9c   : > { %621 = vmatprep.mubr.bf16.mxu0 %v1115_v0  ;;  %664 = vmatprep.mubr.bf16.mxu1 %v1115_v0 }
  0x9e   : > { %592 = vmatpush1.bf16.msra.mxu0 %v1297_v7  ;;  %635 = vmatpush1.bf16.msra.mxu1 %v1300_v8 }
  0x9f   : > { %593 = vmatprep.subr.bf16.mxu0 %v1303_v9  ;;  %636 = vmatprep.subr.bf16.mxu1 %v1305_v10 }
  0xa2   : > { %594 = vmatpush1.bf16.msra.mxu0 %v1307_v11  ;;  %637 = vmatpush1.bf16.msra.mxu1 %v1309_v12 }
  0xa3   : > { %595 = vmatprep.subr.bf16.mxu0 %v1313_v13  ;;  %638 = vmatprep.subr.bf16.mxu1 %v1317_v14 }
  0xa6   : > { %596 = vmatpush1.bf16.msra.mxu0 %v1319_v15  ;;  %639 = vmatpush1.bf16.msra.mxu1 %v1323_v16 }
  0xa7   : > { %597 = vmatprep.subr.bf16.mxu0 %v1325_v17  ;;  %640 = vmatprep.subr.bf16.mxu1 %v1329_v18 }
  0xaa   : > { %598 = vmatpush1.bf16.msra.mxu0 %v1331_v19  ;;  %641 = vmatpush1.bf16.msra.mxu1 %v1333_v20 }
  0xab   : > { %599 = vmatprep.subr.bf16.mxu0 %v1337_v21  ;;  %642 = vmatprep.subr.bf16.mxu1 %v1341_v22 }
  0xae   : > { %600 = vmatpush1.bf16.msra.mxu0 %v1345_v23  ;;  %643 = vmatpush1.bf16.msra.mxu1 %v1347_v24 }
  0xaf   : > { %601 = vmatprep.subr.bf16.mxu0 %v1351_v25  ;;  %644 = vmatprep.subr.bf16.mxu1 %v1353_v26 }
  0xb2   : > { %602 = vmatpush1.bf16.msra.mxu0 %v1357_v27  ;;  %645 = vmatpush1.bf16.msra.mxu1 %v1359_v28 }
  0xb3   : > { %603 = vmatprep.subr.bf16.mxu0 %v1363_v29  ;;  %646 = vmatprep.subr.bf16.mxu1 %v1365_v30 }
  0xb6   : > { %604 = vmatpush1.bf16.msra.mxu0 %v1367_v31  ;;  %647 = vmatpush1.bf16.msra.mxu1 %v1371_v32 }
  0xb9   : > { %622 = vmatmul.mubr.bf16.vlgmr.msra.gmra.mrb[0].mxu0 %v588_v45  ;;  %665 = vmatmul.mubr.bf16.vlgmr.msra.gmra.mrb[0].mxu1 %v588_v45 }
 0x18c   : > { %v623_v46 = vpop.f32.mrb[0].mxu0  ;;  %v666_v47 = vpop.f32.mrb[0].mxu1 }
 0x18d   : > { %691 = vst [vmem:[%s176_s17] sm:$0xff] %v623_v46  ;;  %693 = vst [vmem:[%s176_s17 + $0x10] sm:$0xff] %v666_v47  ;;  %v625_v48 = vpop.f32.mrb[1].mxu0  ;;  %v668_v49 = vpop.f32.mrb[1].mxu1 }
 0x18e   : > { %692 = vst [vmem:[%s176_s17 + $0x8] sm:$0xff] %v625_v48  ;;  %694 = vst [vmem:[%s176_s17 + $0x18] sm:$0xff] %v668_v49  ;;  %v627_v50 = vpop.f32.mrb[2].mxu0  ;;  %v670_v51 = vpop.f32.mrb[2].mxu1 }
 0x18f   : > { %695 = vst [vmem:[%s176_s17 + $0x20] sm:$0xff] %v627_v50  ;;  %697 = vst [vmem:[%s176_s17 + $0x30] sm:$0xff] %v670_v51  ;;  %v629_v52 = vpop.f32.mrb[3].mxu0  ;;  %v672_v53 = vpop.f32.mrb[3].mxu1 }
 0x190   : > { %696 = vst [vmem:[%s176_s17 + $0x28] sm:$0xff] %v629_v52  ;;  %698 = vst [vmem:[%s176_s17 + $0x38] sm:$0xff] %v672_v53 }
 0x191   : > { %1050 = shalt.err (!%p1047_p7)
}
 0x192   : > { %s1051_s24 = scalar_lea.hbm %s1454_s4, 1024  ;;  %s1055_s26 = scalar_lea.hbm %s1499_s2, 8192 }
 0x193   : > { %p1052_p9 = scmp.ne.s32.totalorder %s1454_s4, %s1051_s24  ;;  %p1056_p5 = scmp.lt.u32.totalorder %s1454_s4, %s1499_s2 }
 0x194   : > { %p1057_p2 = scmp.lt.u32.totalorder %s1055_s26, %s1051_s24  ;;  %p1059_p1 = scmp.lt.u32.totalorder %s1051_s24, %s1454_s4 }
 0x195   : > { %p1053_p11 = pnand %p1052_p9, %p1217_p12 }
 0x196   : > { %p1058_p10 = por %p1057_p2, %p1056_p5 }
 0x197   : > { %p1054_p0 = pneg %p1053_p11 }
 0x198   : > { %p1060_p4 = por %p1059_p1, %p1058_p10 }
 0x19a   : > { %p1061_p6 = pnand %p1060_p4, %p1054_p0 }
 0x19c   : > { %1064 = shalt.err (!%p1061_p6)
}
 0x19d   : > { %s1117_s3 = smov 512   ;;  %s1118_s15 = smov 32  }
 0x19e   : > { %873 = dma.vmem_to_hbm [thread:$0]  (%p1217_p12), %s1449_s27, 1024, %s1454_s4, %s700_s13, %s1117_s3, %s1117_s3, %s1118_s15  }
 0x19f PF: > { %p890_p8 = scmp.ge.s32.totalorder %s1107_s12, 2  ;;  %s729_s17 = sand.u32 1, %s1095_s9  }
 0x1a0   : > { %p1514_p13 = scmp.ne.s32.totalorder %s1504_s16, 0  ;;  %s730_s22 = scalar_lea.sflag [#allocation4], %s729_s17 }
 0x1a2   : > { %p884_p3 = pnand %p890_p8, %p1514_p13 }
 0x1a4   : > { %1090 = dma.done.wait (!%p884_p3), %s730_s22, 1024  }
 0x1a5   : > { %1092 = vsyncadd (!%p884_p3), %s730_s22, 4294966272  ;;  %p16_p7 = scmp.ge.s32.totalorder %s1187_s21, 10   ;;  %s1515_s9 = smov %s1099_s10 }
 0x1a6   : > { %s1516_s10 = smov %s1103_s11  ;;  %s1517_s11 = smov %s1213_s8 }
 0x1a7   : > { %s1518_s12 = smov %s1187_s21  ;;  %18 = sbr.rel (!%p16_p7) target bundleno = 6 (0x6), region = 78 }
 0x1ae   :  { %735 = vsyncpa [#allocation3], 1 }
 0x1af   :  { %737 = vsyncpa [#allocation3 + $0x1], 1 }
 0x1b0   :  { %738 = vsyncpa [#allocation6], 1 }
 0x1b1   :  { %740 = vsyncpa [#allocation6 + $0x1], 1 }
 0x1b2   :  { %741 = vsyncpa [#allocation4], 1 }
 0x1b3   :  { %743 = vsyncpa [#allocation4 + $0x1], 1 }

</bundles_post_ra>
